<compile_context>
chip_gen: v5e
topology: v5e:2x2
jax: 0.10.0
libtpu: 0.0.40
codegen_flags: <defaults>
</compile_context>

<pallas_src>
import jax
import jax.numpy as jnp
from jax import lax
from jax.experimental import pallas as pl
from jax.experimental.pallas import tpu as pltpu


def _round_up(n, m):
    return ((n + m - 1) // m) * m


# ----------------------------------------------------------------------------
# Pallas kernel: one GRU layer, one time-chunk of the recurrence per grid step
# ----------------------------------------------------------------------------
def _gru_layer_kernel(x_ref, h0_ref, wih_ref, whh_ref, bih_ref, bhn_ref,
                      out_ref, hT_ref, gi_ref, h_ref):
    # x_ref   : (Tc*B_pad, D_in)    compute dtype (bf16), time-major rows t*B_pad+b
    # h0_ref  : (B_pad, H_pad)      f32 initial hidden state
    # wih_ref : (D_in, 3*H_pad)     compute dtype, gates [r|z|n] at lane offsets 0/Hp/2Hp
    # whh_ref : (H_pad, 3*H_pad)    compute dtype, same gate layout
    # bih_ref : (1, 3*H_pad)        f32, = b_ih + [b_hr | b_hz | 0]  (b_hr/b_hz folded)
    # bhn_ref : (1, H_pad)          f32, = b_hn
    # out_ref : (Tc*B_pad, H_pad)   output chunk (bf16 for hidden layers, f32 for last)
    # hT_ref  : (B_pad, H_pad)      f32 final hidden state (same block every chunk)
    # gi_ref  : (Tc*B_pad, 3*H_pad) f32 scratch (precomputed input projections)
    # h_ref   : (B_pad, H_pad)      f32 scratch (hidden state carried across chunks)
    B, Hp = h0_ref.shape
    Tc = gi_ref.shape[0] // B

    # Initialize the carried hidden state on the first time-chunk only.
    @pl.when(pl.program_id(0) == 0)
    def _():
        h_ref[...] = h0_ref[...]

    # One big, MXU-friendly input projection for every timestep in this chunk.
    # The r/z hidden biases were folded into bih in the wrapper, so the per-step
    # hidden projection below is bias-free except for b_hn.
    gi_ref[...] = (
        jnp.dot(x_ref[...], wih_ref[...], preferred_element_type=jnp.float32)
        + bih_ref[...]
    )

    # Hoist loop-invariant loads / broadcasts out of the recurrence.
    whh = whh_ref[...]
    bhn = jnp.broadcast_to(bhn_ref[...], (B, Hp))

    def step(t, carry):
        base = pl.multiple_of(t * B, B)
        gi = gi_ref[pl.ds(base, B), :]                       # (B, 3*Hp) f32
        h_prev = h_ref[...]                                  # (B, Hp)   f32

        # Single fused hidden projection per step (B rows through the MXU).
        gh = jnp.dot(h_prev.astype(whh.dtype), whh,
                     preferred_element_type=jnp.float32)     # (B, 3*Hp) f32

        # Gate slices are 128-lane-tile aligned (Hp is a multiple of 128).
        r = jax.nn.sigmoid(gi[:, 0:Hp] + gh[:, 0:Hp])
        z = jax.nn.sigmoid(gi[:, Hp:2 * Hp] + gh[:, Hp:2 * Hp])
        n = jnp.tanh(gi[:, 2 * Hp:3 * Hp] + r * (gh[:, 2 * Hp:3 * Hp] + bhn))
        h_new = (1.0 - z) * n + z * h_prev

        h_ref[...] = h_new
        out_ref[pl.ds(base, B), :] = h_new.astype(out_ref.dtype)
        return carry

    # Capped unroll: LLO scheduling visibility without blowing up vreg live ranges.
    lax.fori_loop(0, Tc, step, 0, unroll=min(Tc, 8))

    # Same output block every chunk -> written back to HBM once at the end.
    hT_ref[...] = h_ref[...]


def _pick_time_chunk(T, B_pad, D_in, H_pad, out_itemsize, budget_bytes):
    """Largest divisor of T whose per-chunk VMEM footprint stays under budget.

    Per time-step footprint: gi scratch (f32) + double-buffered bf16 x chunk +
    double-buffered out chunk.  Weights are small and counted in the headroom.
    """
    per_step = B_pad * (3 * H_pad * 4 + 2 * D_in * 2 + 2 * H_pad * out_itemsize)
    tc = int(max(1, min(T, budget_bytes // max(per_step, 1))))
    while T % tc:
        tc -= 1
    return tc


def gru_layer_pallas(x_flat, h0, wih, whh, bih, bhn, *, T, B_pad,
                     out_dtype=jnp.bfloat16, time_chunk=None,
                     vmem_budget_bytes=24 * 1024 * 1024):
    """One GRU layer over the full sequence.

    x_flat: (T*B_pad, D_in) time-major rows (bf16), h0: (B_pad, H_pad) f32,
    wih: (D_in, 3*H_pad), whh: (H_pad, 3*H_pad), bih: (1, 3*H_pad), bhn: (1, H_pad).
    Returns (out_flat (T*B_pad, H_pad) out_dtype, hT (B_pad, H_pad) f32).
    """
    D_in = x_flat.shape[-1]
    H_pad = h0.shape[-1]
    if time_chunk is None:
        time_chunk = _pick_time_chunk(T, B_pad, D_in, H_pad,
                                      jnp.dtype(out_dtype).itemsize,
                                      vmem_budget_bytes)
    assert T % time_chunk == 0, "time_chunk must divide T"
    Tc = time_chunk
    num_chunks = T // Tc

    out_flat, hT = pl.pallas_call(
        _gru_layer_kernel,
        out_shape=(jax.ShapeDtypeStruct((T * B_pad, H_pad), out_dtype),
                   jax.ShapeDtypeStruct((B_pad, H_pad), jnp.float32)),
        grid_spec=pltpu.PrefetchScalarGridSpec(
            num_scalar_prefetch=0,
            grid=(num_chunks,),
            in_specs=[
                pl.BlockSpec((Tc * B_pad, D_in), lambda i: (i, 0)),   # x chunk
                pl.BlockSpec((B_pad, H_pad), lambda i: (0, 0)),       # h0
                pl.BlockSpec((D_in, 3 * H_pad), lambda i: (0, 0)),    # W_ih fused
                pl.BlockSpec((H_pad, 3 * H_pad), lambda i: (0, 0)),   # W_hh fused
                pl.BlockSpec((1, 3 * H_pad), lambda i: (0, 0)),       # b_ih (+b_hr,b_hz)
                pl.BlockSpec((1, H_pad), lambda i: (0, 0)),           # b_hn
            ],
            out_specs=[
                pl.BlockSpec((Tc * B_pad, H_pad), lambda i: (i, 0)),  # out chunk
                pl.BlockSpec((B_pad, H_pad), lambda i: (0, 0)),       # final hidden
            ],
            scratch_shapes=[
                pltpu.VMEM((Tc * B_pad, 3 * H_pad), jnp.float32),     # gi scratch
                pltpu.VMEM((B_pad, H_pad), jnp.float32),              # carried h
            ],
        ),
        compiler_params=pltpu.CompilerParams(
            dimension_semantics=("arbitrary",),        # sequential recurrence over chunks
            vmem_limit_bytes=48 * 1024 * 1024),        # fits v7x's 64 MiB with headroom
    )(x_flat, h0, wih, whh, bih, bhn)
    return out_flat, hT


# ----------------------------------------------------------------------------
# Parameter prep: lane-padded, gate-tile-aligned fused weights + folded biases
# ----------------------------------------------------------------------------
def _prepare_layer_params(wih, whh, bih, bhh, d_in_rows, h_pad, compute_dtype):
    """wih: (d_in, 3H), whh: (H, 3H), bih/bhh: (1, 3H); gate order [r|z|n]."""
    H = wih.shape[1] // 3

    def pad_gates(w, rows):
        out = jnp.zeros((rows, 3 * h_pad), w.dtype)
        for g in range(3):
            out = out.at[:w.shape[0], g * h_pad:g * h_pad + H].set(
                w[:, g * H:(g + 1) * H])
        return out

    wih_p = pad_gates(wih, d_in_rows).astype(compute_dtype)
    whh_p = pad_gates(whh, h_pad).astype(compute_dtype)

    bih_p = jnp.zeros((1, 3 * h_pad), jnp.float32)
    bih_p = bih_p.at[:, 0:H].set(bih[:, 0:H] + bhh[:, 0:H])                  # r
    bih_p = bih_p.at[:, h_pad:h_pad + H].set(bih[:, H:2 * H] + bhh[:, H:2 * H])  # z
    bih_p = bih_p.at[:, 2 * h_pad:2 * h_pad + H].set(bih[:, 2 * H:3 * H])    # n (x part)
    bhn_p = jnp.zeros((1, h_pad), jnp.float32).at[:, 0:H].set(bhh[:, 2 * H:3 * H])
    return wih_p, whh_p, bih_p, bhn_p


# ----------------------------------------------------------------------------
# EncoderRNN forward (multi-layer GRU, batch_first) built on the kernel
# ----------------------------------------------------------------------------
def encoder_rnn_forward(x, hidden, params, compute_dtype=jnp.bfloat16,
                        time_chunk=None):
    """x: (B, T, input_size), hidden: (num_layers, B, H).
       Returns (output (B, T, H) f32, hidden (num_layers, B, H) f32) like nn.GRU."""
    B, T, D_in = x.shape
    H = hidden.shape[-1]
    num_layers = len(params)
    B_pad = _round_up(B, 8)        # sublane-dense rows
    H_pad = _round_up(H, 128)      # lane-dense output / gate tiles

    # One transpose + pad at the boundary; inter-layer tensors stay in this
    # time-major, batch/lane-padded, flattened layout (rows t*B_pad + b), bf16.
    x_tm = jnp.transpose(x, (1, 0, 2))
    x_tm = jnp.pad(x_tm, ((0, 0), (0, B_pad - B), (0, 0)))
    layer_in = x_tm.reshape(T * B_pad, D_in).astype(compute_dtype)

    final_h = []
    out_flat = None
    for l, (wih, whh, bih, bhh) in enumerate(params):
        d_rows = D_in if l == 0 else H_pad
        wih_p, whh_p, bih_p, bhn_p = _prepare_layer_params(
            wih, whh, bih, bhh, d_rows, H_pad, compute_dtype)
        h0 = jnp.zeros((B_pad, H_pad), jnp.float32).at[:B, :H].set(hidden[l])

        is_last = (l == num_layers - 1)
        out_flat, hT = gru_layer_pallas(
            layer_in, h0, wih_p, whh_p, bih_p, bhn_p,
            T=T, B_pad=B_pad,
            out_dtype=jnp.float32 if is_last else compute_dtype,
            time_chunk=time_chunk)
        layer_in = out_flat                      # already bf16 for hidden layers
        final_h.append(hT[:B, :H])               # strip pad rows/lanes

    output = out_flat.reshape(T, B_pad, H_pad)[:, :B, :H]
    output = jnp.transpose(output, (1, 0, 2)).astype(jnp.float32)
    return output, jnp.stack(final_h, axis=0)


# ----------------------------------------------------------------------------
# Pure-JAX reference (same equations, lax.scan) for correctness checks
# ----------------------------------------------------------------------------
def _gru_layer_ref(x_tm, h0, wih, whh, bih, bhh, compute_dtype):
    H = h0.shape[-1]
    wih_c = wih.astype(compute_dtype)
    whh_c = whh.astype(compute_dtype)

    def step(h, x_t):
        gi = jnp.dot(x_t.astype(compute_dtype), wih_c,
                     preferred_element_type=jnp.float32) + bih
        gh = jnp.dot(h.astype(compute_dtype), whh_c,
                     preferred_element_type=jnp.float32) + bhh
        r = jax.nn.sigmoid(gi[:, 0:H] + gh[:, 0:H])
        z = jax.nn.sigmoid(gi[:, H:2 * H] + gh[:, H:2 * H])
        n = jnp.tanh(gi[:, 2 * H:3 * H] + r * gh[:, 2 * H:3 * H])
        h_new = (1.0 - z) * n + z * h
        return h_new, h_new

    hT, out = lax.scan(step, h0, x_tm)
    return out, hT


def encoder_rnn_ref(x, hidden, params, compute_dtype=jnp.bfloat16):
    layer_in = jnp.transpose(x, (1, 0, 2))
    final_h = []
    for l, (wih, whh, bih, bhh) in enumerate(params):
        layer_in, hT = _gru_layer_ref(layer_in, hidden[l], wih, whh, bih, bhh,
                                      compute_dtype)
        final_h.append(hT)
    return jnp.transpose(layer_in, (1, 0, 2)), jnp.stack(final_h, axis=0)


# ----------------------------------------------------------------------------
# Deterministic parameter init (mimics PyTorch GRU uniform(-1/sqrt(H), 1/sqrt(H)))
# Fused layout: wih = W_ih^T with gate columns [r | z | n], same for whh.
# ----------------------------------------------------------------------------
def init_gru_params(key, input_size, hidden_size, num_layers):
    params = []
    bound = 1.0 / float(hidden_size) ** 0.5
    for l in range(num_layers):
        d_in = input_size if l == 0 else hidden_size
        key, k1, k2, k3, k4 = jax.random.split(key, 5)
        wih = jax.random.uniform(k1, (d_in, 3 * hidden_size), jnp.float32, -bound, bound)
        whh = jax.random.uniform(k2, (hidden_size, 3 * hidden_size), jnp.float32, -bound, bound)
        bih = jax.random.uniform(k3, (1, 3 * hidden_size), jnp.float32, -bound, bound)
        bhh = jax.random.uniform(k4, (1, 3 * hidden_size), jnp.float32, -bound, bound)
        params.append((wih, whh, bih, bhh))
    return params


if __name__ == "__main__":
    # Small shapes consistent with EncoderRNN(input_size, hidden_size, layers, batch)
    batch_size = 2
    seq_len = 8
    input_size = 8
    hidden_size = 32
    num_grulstm_layers = 2

    key = jax.random.PRNGKey(0)
    key, kx = jax.random.split(key)
    x = jax.random.normal(kx, (batch_size, seq_len, input_size), jnp.float32)
    # init_hidden(): zeros of shape (num_layers, batch, hidden)
    hidden0 = jnp.zeros((num_grulstm_layers, batch_size, hidden_size), jnp.float32)

    params = init_gru_params(key, input_size, hidden_size, num_grulstm_layers)

    # time_chunk=4 -> 2 grid steps, exercising the chunked/carried-state path.
    out, hidden_out = encoder_rnn_forward(x, hidden0, params, time_chunk=4)
    out = jax.block_until_ready(out)
    hidden_out = jax.block_until_ready(hidden_out)

    # Tight check against a precision-matched (bf16 matmul inputs, f32 accum) reference.
    out_ref, hidden_ref = encoder_rnn_ref(x, hidden0, params,
                                          compute_dtype=jnp.bfloat16)
    # Loose check against the full-f32 reference (PyTorch-equivalent semantics).
    out_f32, hidden_f32 = encoder_rnn_ref(x, hidden0, params,
                                          compute_dtype=jnp.float32)

    assert out.shape == (batch_size, seq_len, hidden_size)
    assert hidden_out.shape == (num_grulstm_layers, batch_size, hidden_size)
    assert jnp.allclose(out, out_ref, atol=2e-3, rtol=2e-3)
    assert jnp.allclose(hidden_out, hidden_ref, atol=2e-3, rtol=2e-3)
    assert jnp.allclose(out, out_f32, atol=1e-1)
    assert jnp.allclose(hidden_out, hidden_f32, atol=1e-1)

    print("KERNEL_OK")
</pallas_src>

<mosaic_0001>
module attributes {stable_mosaic.version = 11 : i64} {
  func.func @_gru_layer_kernel(%arg0: i32, %arg1: memref<32x8xbf16, #tpu.memory_space<vmem>>, %arg2: memref<8x128xf32, #tpu.memory_space<vmem>>, %arg3: memref<8x384xbf16, #tpu.memory_space<vmem>>, %arg4: memref<128x384xbf16, #tpu.memory_space<vmem>>, %arg5: memref<1x384xf32, #tpu.memory_space<vmem>>, %arg6: memref<1x128xf32, #tpu.memory_space<vmem>>, %arg7: memref<32x128xbf16, #tpu.memory_space<vmem>>, %arg8: memref<8x128xf32, #tpu.memory_space<vmem>>, %arg9: memref<32x384xf32, #tpu.memory_space<vmem>>, %arg10: memref<8x128xf32, #tpu.memory_space<vmem>>) attributes {dimension_semantics = [#tpu.dimension_semantics<arbitrary>], iteration_bounds = array<i64: 2>, scalar_prefetch = 0 : i64, scratch_operands = 2 : i64, tpu.core_type = #tpu.core_type<tc>, window_params = [{transform_indices = @transform_0, window_bounds = array<i64: 32, 8>}, {pipeline_mode = #tpu.pipeline_mode<synchronous>, transform_indices = @transform_1, window_bounds = array<i64: 8, 128>}, {pipeline_mode = #tpu.pipeline_mode<synchronous>, transform_indices = @transform_2, window_bounds = array<i64: 8, 384>}, {pipeline_mode = #tpu.pipeline_mode<synchronous>, transform_indices = @transform_3, window_bounds = array<i64: 128, 384>}, {pipeline_mode = #tpu.pipeline_mode<synchronous>, transform_indices = @transform_4, window_bounds = array<i64: 1, 384>}, {pipeline_mode = #tpu.pipeline_mode<synchronous>, transform_indices = @transform_5, window_bounds = array<i64: 1, 128>}, {transform_indices = @transform_6, window_bounds = array<i64: 32, 128>}, {pipeline_mode = #tpu.pipeline_mode<synchronous>, transform_indices = @transform_7, window_bounds = array<i64: 8, 128>}]} {
    %c0_i32 = arith.constant 0 : i32
    %0 = arith.cmpi eq, %arg0, %c0_i32 : i32
    %1 = arith.extui %0 : i1 to i32
    %c0_i32_0 = arith.constant 0 : i32
    %2 = arith.cmpi ne, %1, %c0_i32_0 : i32
    scf.if %2 {
      %c0_60 = arith.constant 0 : index
      %c0_61 = arith.constant 0 : index
      %168 = vector.load %arg2[%c0_60, %c0_61] : memref<8x128xf32, #tpu.memory_space<vmem>>, vector<8x128xf32>
      %c0_62 = arith.constant 0 : index
      %c0_63 = arith.constant 0 : index
      %169 = vector.load %arg10[%c0_62, %c0_63] : memref<8x128xf32, #tpu.memory_space<vmem>>, vector<8x128xf32>
      tpu.vector_store %arg10[%c0_62, %c0_63], %168 {strides = array<i32>} : memref<8x128xf32, #tpu.memory_space<vmem>>, vector<8x128xf32>,
    } else {
    }
    %c0 = arith.constant 0 : index
    %c0_1 = arith.constant 0 : index
    %3 = vector.load %arg1[%c0, %c0_1] : memref<32x8xbf16, #tpu.memory_space<vmem>>, vector<32x8xbf16>
    %c0_2 = arith.constant 0 : index
    %c0_3 = arith.constant 0 : index
    %4 = vector.load %arg3[%c0_2, %c0_3] : memref<8x384xbf16, #tpu.memory_space<vmem>>, vector<8x384xbf16>
    %cst = arith.constant dense<0.000000e+00> : vector<32x384xf32>
    %5 = tpu.matmul %3, %4, %cst {dimension_numbers = #tpu.dot_dimension_numbers<[1], [0], [0], [1], [0, 0, 1, 1], [], []>} : vector<32x8xbf16>, vector<8x384xbf16>, vector<32x384xf32> -> vector<32x384xf32>
    %c0_4 = arith.constant 0 : index
    %c0_5 = arith.constant 0 : index
    %6 = vector.load %arg5[%c0_4, %c0_5] : memref<1x384xf32, #tpu.memory_space<vmem>>, vector<1x384xf32>
    %7 = vector.broadcast %6 : vector<1x384xf32> to vector<32x384xf32>
    %8 = arith.addf %5, %7 : vector<32x384xf32>
    %c0_6 = arith.constant 0 : index
    %c0_7 = arith.constant 0 : index
    %9 = vector.load %arg9[%c0_6, %c0_7] : memref<32x384xf32, #tpu.memory_space<vmem>>, vector<32x384xf32>
    tpu.vector_store %arg9[%c0_6, %c0_7], %8 {strides = array<i32>} : memref<32x384xf32, #tpu.memory_space<vmem>>, vector<32x384xf32>,
    %c0_8 = arith.constant 0 : index
    %c0_9 = arith.constant 0 : index
    %10 = vector.load %arg4[%c0_8, %c0_9] : memref<128x384xbf16, #tpu.memory_space<vmem>>, vector<128x384xbf16>
    %c0_10 = arith.constant 0 : index
    %c0_11 = arith.constant 0 : index
    %11 = vector.load %arg6[%c0_10, %c0_11] : memref<1x128xf32, #tpu.memory_space<vmem>>, vector<1x128xf32>
    %12 = vector.shape_cast %11 : vector<1x128xf32> to vector<1x128xf32>
    %13 = vector.broadcast %12 : vector<1x128xf32> to vector<8x128xf32>
    %c0_i32_12 = arith.constant 0 : i32
    %c8_i32 = arith.constant 8 : i32
    %14 = arith.muli %c0_i32_12, %c8_i32 : i32
    %15 = tpu.assume_multiple %14, 8 : i32
    %16 = arith.index_cast %15 : i32 to index
    %c0_13 = arith.constant 0 : index
    %17 = vector.load %arg9[%16, %c0_13] : memref<32x384xf32, #tpu.memory_space<vmem>>, vector<8x384xf32>
    %c0_14 = arith.constant 0 : index
    %c0_15 = arith.constant 0 : index
    %18 = vector.load %arg10[%c0_14, %c0_15] : memref<8x128xf32, #tpu.memory_space<vmem>>, vector<8x128xf32>
    %19 = arith.truncf %18 : vector<8x128xf32> to vector<8x128xbf16>
    %cst_16 = arith.constant dense<0.000000e+00> : vector<8x384xf32>
    %20 = tpu.matmul %19, %10, %cst_16 {dimension_numbers = #tpu.dot_dimension_numbers<[1], [0], [0], [1], [0, 0, 1, 1], [], []>} : vector<8x128xbf16>, vector<128x384xbf16>, vector<8x384xf32> -> vector<8x384xf32>
    %21 = vector.extract_strided_slice %17 {offsets = [0, 0], sizes = [8, 128], strides = [1, 1]} : vector<8x384xf32> to vector<8x128xf32>
    %22 = vector.extract_strided_slice %20 {offsets = [0, 0], sizes = [8, 128], strides = [1, 1]} : vector<8x384xf32> to vector<8x128xf32>
    %23 = arith.addf %21, %22 : vector<8x128xf32>
    %24 = arith.negf %23 : vector<8x128xf32>
    %25 = math.exp %24 : vector<8x128xf32>
    %cst_17 = arith.constant 1.000000e+00 : f32
    %26 = vector.broadcast %cst_17 : f32 to vector<8x128xf32>
    %27 = arith.addf %26, %25 : vector<8x128xf32>
    %28 = arith.divf %26, %27 : vector<8x128xf32>
    %29 = vector.extract_strided_slice %17 {offsets = [0, 128], sizes = [8, 128], strides = [1, 1]} : vector<8x384xf32> to vector<8x128xf32>
    %30 = vector.extract_strided_slice %20 {offsets = [0, 128], sizes = [8, 128], strides = [1, 1]} : vector<8x384xf32> to vector<8x128xf32>
    %31 = arith.addf %29, %30 : vector<8x128xf32>
    %32 = arith.negf %31 : vector<8x128xf32>
    %33 = math.exp %32 : vector<8x128xf32>
    %cst_18 = arith.constant 1.000000e+00 : f32
    %34 = vector.broadcast %cst_18 : f32 to vector<8x128xf32>
    %35 = arith.addf %34, %33 : vector<8x128xf32>
    %36 = arith.divf %34, %35 : vector<8x128xf32>
    %37 = vector.extract_strided_slice %17 {offsets = [0, 256], sizes = [8, 128], strides = [1, 1]} : vector<8x384xf32> to vector<8x128xf32>
    %38 = vector.extract_strided_slice %20 {offsets = [0, 256], sizes = [8, 128], strides = [1, 1]} : vector<8x384xf32> to vector<8x128xf32>
    %39 = arith.addf %38, %13 : vector<8x128xf32>
    %40 = arith.mulf %28, %39 : vector<8x128xf32>
    %41 = arith.addf %37, %40 : vector<8x128xf32>
    %42 = math.tanh %41 : vector<8x128xf32>
    %cst_19 = arith.constant 1.000000e+00 : f32
    %43 = vector.broadcast %cst_19 : f32 to vector<8x128xf32>
    %44 = arith.subf %43, %36 : vector<8x128xf32>
    %45 = arith.mulf %44, %42 : vector<8x128xf32>
    %46 = arith.mulf %36, %18 : vector<8x128xf32>
    %47 = arith.addf %45, %46 : vector<8x128xf32>
    %c0_20 = arith.constant 0 : index
    %c0_21 = arith.constant 0 : index
    %48 = vector.load %arg10[%c0_20, %c0_21] : memref<8x128xf32, #tpu.memory_space<vmem>>, vector<8x128xf32>
    tpu.vector_store %arg10[%c0_20, %c0_21], %47 {strides = array<i32>} : memref<8x128xf32, #tpu.memory_space<vmem>>, vector<8x128xf32>,
    %49 = arith.truncf %47 : vector<8x128xf32> to vector<8x128xbf16>
    %50 = arith.index_cast %15 : i32 to index
    %c0_22 = arith.constant 0 : index
    %51 = vector.load %arg7[%50, %c0_22] : memref<32x128xbf16, #tpu.memory_space<vmem>>, vector<8x128xbf16>
    tpu.vector_store %arg7[%50, %c0_22], %49 {strides = array<i32>} : memref<32x128xbf16, #tpu.memory_space<vmem>>, vector<8x128xbf16>,
    %c1_i32 = arith.constant 1 : i32
    %c8_i32_23 = arith.constant 8 : i32
    %52 = arith.muli %c1_i32, %c8_i32_23 : i32
    %53 = tpu.assume_multiple %52, 8 : i32
    %54 = arith.index_cast %53 : i32 to index
    %c0_24 = arith.constant 0 : index
    %55 = vector.load %arg9[%54, %c0_24] : memref<32x384xf32, #tpu.memory_space<vmem>>, vector<8x384xf32>
    %c0_25 = arith.constant 0 : index
    %c0_26 = arith.constant 0 : index
    %56 = vector.load %arg10[%c0_25, %c0_26] : memref<8x128xf32, #tpu.memory_space<vmem>>, vector<8x128xf32>
    %57 = arith.truncf %56 : vector<8x128xf32> to vector<8x128xbf16>
    %cst_27 = arith.constant dense<0.000000e+00> : vector<8x384xf32>
    %58 = tpu.matmul %57, %10, %cst_27 {dimension_numbers = #tpu.dot_dimension_numbers<[1], [0], [0], [1], [0, 0, 1, 1], [], []>} : vector<8x128xbf16>, vector<128x384xbf16>, vector<8x384xf32> -> vector<8x384xf32>
    %59 = vector.extract_strided_slice %55 {offsets = [0, 0], sizes = [8, 128], strides = [1, 1]} : vector<8x384xf32> to vector<8x128xf32>
    %60 = vector.extract_strided_slice %58 {offsets = [0, 0], sizes = [8, 128], strides = [1, 1]} : vector<8x384xf32> to vector<8x128xf32>
    %61 = arith.addf %59, %60 : vector<8x128xf32>
    %62 = arith.negf %61 : vector<8x128xf32>
    %63 = math.exp %62 : vector<8x128xf32>
    %cst_28 = arith.constant 1.000000e+00 : f32
    %64 = vector.broadcast %cst_28 : f32 to vector<8x128xf32>
    %65 = arith.addf %64, %63 : vector<8x128xf32>
    %66 = arith.divf %64, %65 : vector<8x128xf32>
    %67 = vector.extract_strided_slice %55 {offsets = [0, 128], sizes = [8, 128], strides = [1, 1]} : vector<8x384xf32> to vector<8x128xf32>
    %68 = vector.extract_strided_slice %58 {offsets = [0, 128], sizes = [8, 128], strides = [1, 1]} : vector<8x384xf32> to vector<8x128xf32>
    %69 = arith.addf %67, %68 : vector<8x128xf32>
    %70 = arith.negf %69 : vector<8x128xf32>
    %71 = math.exp %70 : vector<8x128xf32>
    %cst_29 = arith.constant 1.000000e+00 : f32
    %72 = vector.broadcast %cst_29 : f32 to vector<8x128xf32>
    %73 = arith.addf %72, %71 : vector<8x128xf32>
    %74 = arith.divf %72, %73 : vector<8x128xf32>
    %75 = vector.extract_strided_slice %55 {offsets = [0, 256], sizes = [8, 128], strides = [1, 1]} : vector<8x384xf32> to vector<8x128xf32>
    %76 = vector.extract_strided_slice %58 {offsets = [0, 256], sizes = [8, 128], strides = [1, 1]} : vector<8x384xf32> to vector<8x128xf32>
    %77 = arith.addf %76, %13 : vector<8x128xf32>
    %78 = arith.mulf %66, %77 : vector<8x128xf32>
    %79 = arith.addf %75, %78 : vector<8x128xf32>
    %80 = math.tanh %79 : vector<8x128xf32>
    %cst_30 = arith.constant 1.000000e+00 : f32
    %81 = vector.broadcast %cst_30 : f32 to vector<8x128xf32>
    %82 = arith.subf %81, %74 : vector<8x128xf32>
    %83 = arith.mulf %82, %80 : vector<8x128xf32>
    %84 = arith.mulf %74, %56 : vector<8x128xf32>
    %85 = arith.addf %83, %84 : vector<8x128xf32>
    %c0_31 = arith.constant 0 : index
    %c0_32 = arith.constant 0 : index
    %86 = vector.load %arg10[%c0_31, %c0_32] : memref<8x128xf32, #tpu.memory_space<vmem>>, vector<8x128xf32>
    tpu.vector_store %arg10[%c0_31, %c0_32], %85 {strides = array<i32>} : memref<8x128xf32, #tpu.memory_space<vmem>>, vector<8x128xf32>,
    %87 = arith.truncf %85 : vector<8x128xf32> to vector<8x128xbf16>
    %88 = arith.index_cast %53 : i32 to index
    %c0_33 = arith.constant 0 : index
    %89 = vector.load %arg7[%88, %c0_33] : memref<32x128xbf16, #tpu.memory_space<vmem>>, vector<8x128xbf16>
    tpu.vector_store %arg7[%88, %c0_33], %87 {strides = array<i32>} : memref<32x128xbf16, #tpu.memory_space<vmem>>, vector<8x128xbf16>,
    %c2_i32 = arith.constant 2 : i32
    %c8_i32_34 = arith.constant 8 : i32
    %90 = arith.muli %c2_i32, %c8_i32_34 : i32
    %91 = tpu.assume_multiple %90, 8 : i32
    %92 = arith.index_cast %91 : i32 to index
    %c0_35 = arith.constant 0 : index
    %93 = vector.load %arg9[%92, %c0_35] : memref<32x384xf32, #tpu.memory_space<vmem>>, vector<8x384xf32>
    %c0_36 = arith.constant 0 : index
    %c0_37 = arith.constant 0 : index
    %94 = vector.load %arg10[%c0_36, %c0_37] : memref<8x128xf32, #tpu.memory_space<vmem>>, vector<8x128xf32>
    %95 = arith.truncf %94 : vector<8x128xf32> to vector<8x128xbf16>
    %cst_38 = arith.constant dense<0.000000e+00> : vector<8x384xf32>
    %96 = tpu.matmul %95, %10, %cst_38 {dimension_numbers = #tpu.dot_dimension_numbers<[1], [0], [0], [1], [0, 0, 1, 1], [], []>} : vector<8x128xbf16>, vector<128x384xbf16>, vector<8x384xf32> -> vector<8x384xf32>
    %97 = vector.extract_strided_slice %93 {offsets = [0, 0], sizes = [8, 128], strides = [1, 1]} : vector<8x384xf32> to vector<8x128xf32>
    %98 = vector.extract_strided_slice %96 {offsets = [0, 0], sizes = [8, 128], strides = [1, 1]} : vector<8x384xf32> to vector<8x128xf32>
    %99 = arith.addf %97, %98 : vector<8x128xf32>
    %100 = arith.negf %99 : vector<8x128xf32>
    %101 = math.exp %100 : vector<8x128xf32>
    %cst_39 = arith.constant 1.000000e+00 : f32
    %102 = vector.broadcast %cst_39 : f32 to vector<8x128xf32>
    %103 = arith.addf %102, %101 : vector<8x128xf32>
    %104 = arith.divf %102, %103 : vector<8x128xf32>
    %105 = vector.extract_strided_slice %93 {offsets = [0, 128], sizes = [8, 128], strides = [1, 1]} : vector<8x384xf32> to vector<8x128xf32>
    %106 = vector.extract_strided_slice %96 {offsets = [0, 128], sizes = [8, 128], strides = [1, 1]} : vector<8x384xf32> to vector<8x128xf32>
    %107 = arith.addf %105, %106 : vector<8x128xf32>
    %108 = arith.negf %107 : vector<8x128xf32>
    %109 = math.exp %108 : vector<8x128xf32>
    %cst_40 = arith.constant 1.000000e+00 : f32
    %110 = vector.broadcast %cst_40 : f32 to vector<8x128xf32>
    %111 = arith.addf %110, %109 : vector<8x128xf32>
    %112 = arith.divf %110, %111 : vector<8x128xf32>
    %113 = vector.extract_strided_slice %93 {offsets = [0, 256], sizes = [8, 128], strides = [1, 1]} : vector<8x384xf32> to vector<8x128xf32>
    %114 = vector.extract_strided_slice %96 {offsets = [0, 256], sizes = [8, 128], strides = [1, 1]} : vector<8x384xf32> to vector<8x128xf32>
    %115 = arith.addf %114, %13 : vector<8x128xf32>
    %116 = arith.mulf %104, %115 : vector<8x128xf32>
    %117 = arith.addf %113, %116 : vector<8x128xf32>
    %118 = math.tanh %117 : vector<8x128xf32>
    %cst_41 = arith.constant 1.000000e+00 : f32
    %119 = vector.broadcast %cst_41 : f32 to vector<8x128xf32>
    %120 = arith.subf %119, %112 : vector<8x128xf32>
    %121 = arith.mulf %120, %118 : vector<8x128xf32>
    %122 = arith.mulf %112, %94 : vector<8x128xf32>
    %123 = arith.addf %121, %122 : vector<8x128xf32>
    %c0_42 = arith.constant 0 : index
    %c0_43 = arith.constant 0 : index
    %124 = vector.load %arg10[%c0_42, %c0_43] : memref<8x128xf32, #tpu.memory_space<vmem>>, vector<8x128xf32>
    tpu.vector_store %arg10[%c0_42, %c0_43], %123 {strides = array<i32>} : memref<8x128xf32, #tpu.memory_space<vmem>>, vector<8x128xf32>,
    %125 = arith.truncf %123 : vector<8x128xf32> to vector<8x128xbf16>
    %126 = arith.index_cast %91 : i32 to index
    %c0_44 = arith.constant 0 : index
    %127 = vector.load %arg7[%126, %c0_44] : memref<32x128xbf16, #tpu.memory_space<vmem>>, vector<8x128xbf16>
    tpu.vector_store %arg7[%126, %c0_44], %125 {strides = array<i32>} : memref<32x128xbf16, #tpu.memory_space<vmem>>, vector<8x128xbf16>,
    %c3_i32 = arith.constant 3 : i32
    %c8_i32_45 = arith.constant 8 : i32
    %128 = arith.muli %c3_i32, %c8_i32_45 : i32
    %129 = tpu.assume_multiple %128, 8 : i32
    %130 = arith.index_cast %129 : i32 to index
    %c0_46 = arith.constant 0 : index
    %131 = vector.load %arg9[%130, %c0_46] : memref<32x384xf32, #tpu.memory_space<vmem>>, vector<8x384xf32>
    %c0_47 = arith.constant 0 : index
    %c0_48 = arith.constant 0 : index
    %132 = vector.load %arg10[%c0_47, %c0_48] : memref<8x128xf32, #tpu.memory_space<vmem>>, vector<8x128xf32>
    %133 = arith.truncf %132 : vector<8x128xf32> to vector<8x128xbf16>
    %cst_49 = arith.constant dense<0.000000e+00> : vector<8x384xf32>
    %134 = tpu.matmul %133, %10, %cst_49 {dimension_numbers = #tpu.dot_dimension_numbers<[1], [0], [0], [1], [0, 0, 1, 1], [], []>} : vector<8x128xbf16>, vector<128x384xbf16>, vector<8x384xf32> -> vector<8x384xf32>
    %135 = vector.extract_strided_slice %131 {offsets = [0, 0], sizes = [8, 128], strides = [1, 1]} : vector<8x384xf32> to vector<8x128xf32>
    %136 = vector.extract_strided_slice %134 {offsets = [0, 0], sizes = [8, 128], strides = [1, 1]} : vector<8x384xf32> to vector<8x128xf32>
    %137 = arith.addf %135, %136 : vector<8x128xf32>
    %138 = arith.negf %137 : vector<8x128xf32>
    %139 = math.exp %138 : vector<8x128xf32>
    %cst_50 = arith.constant 1.000000e+00 : f32
    %140 = vector.broadcast %cst_50 : f32 to vector<8x128xf32>
    %141 = arith.addf %140, %139 : vector<8x128xf32>
    %142 = arith.divf %140, %141 : vector<8x128xf32>
    %143 = vector.extract_strided_slice %131 {offsets = [0, 128], sizes = [8, 128], strides = [1, 1]} : vector<8x384xf32> to vector<8x128xf32>
    %144 = vector.extract_strided_slice %134 {offsets = [0, 128], sizes = [8, 128], strides = [1, 1]} : vector<8x384xf32> to vector<8x128xf32>
    %145 = arith.addf %143, %144 : vector<8x128xf32>
    %146 = arith.negf %145 : vector<8x128xf32>
    %147 = math.exp %146 : vector<8x128xf32>
    %cst_51 = arith.constant 1.000000e+00 : f32
    %148 = vector.broadcast %cst_51 : f32 to vector<8x128xf32>
    %149 = arith.addf %148, %147 : vector<8x128xf32>
    %150 = arith.divf %148, %149 : vector<8x128xf32>
    %151 = vector.extract_strided_slice %131 {offsets = [0, 256], sizes = [8, 128], strides = [1, 1]} : vector<8x384xf32> to vector<8x128xf32>
    %152 = vector.extract_strided_slice %134 {offsets = [0, 256], sizes = [8, 128], strides = [1, 1]} : vector<8x384xf32> to vector<8x128xf32>
    %153 = arith.addf %152, %13 : vector<8x128xf32>
    %154 = arith.mulf %142, %153 : vector<8x128xf32>
    %155 = arith.addf %151, %154 : vector<8x128xf32>
    %156 = math.tanh %155 : vector<8x128xf32>
    %cst_52 = arith.constant 1.000000e+00 : f32
    %157 = vector.broadcast %cst_52 : f32 to vector<8x128xf32>
    %158 = arith.subf %157, %150 : vector<8x128xf32>
    %159 = arith.mulf %158, %156 : vector<8x128xf32>
    %160 = arith.mulf %150, %132 : vector<8x128xf32>
    %161 = arith.addf %159, %160 : vector<8x128xf32>
    %c0_53 = arith.constant 0 : index
    %c0_54 = arith.constant 0 : index
    %162 = vector.load %arg10[%c0_53, %c0_54] : memref<8x128xf32, #tpu.memory_space<vmem>>, vector<8x128xf32>
    tpu.vector_store %arg10[%c0_53, %c0_54], %161 {strides = array<i32>} : memref<8x128xf32, #tpu.memory_space<vmem>>, vector<8x128xf32>,
    %163 = arith.truncf %161 : vector<8x128xf32> to vector<8x128xbf16>
    %164 = arith.index_cast %129 : i32 to index
    %c0_55 = arith.constant 0 : index
    %165 = vector.load %arg7[%164, %c0_55] : memref<32x128xbf16, #tpu.memory_space<vmem>>, vector<8x128xbf16>
    tpu.vector_store %arg7[%164, %c0_55], %163 {strides = array<i32>} : memref<32x128xbf16, #tpu.memory_space<vmem>>, vector<8x128xbf16>,
    %c4_i32 = arith.constant 4 : i32
    %c0_56 = arith.constant 0 : index
    %c0_57 = arith.constant 0 : index
    %166 = vector.load %arg10[%c0_56, %c0_57] : memref<8x128xf32, #tpu.memory_space<vmem>>, vector<8x128xf32>
    %c0_58 = arith.constant 0 : index
    %c0_59 = arith.constant 0 : index
    %167 = vector.load %arg8[%c0_58, %c0_59] : memref<8x128xf32, #tpu.memory_space<vmem>>, vector<8x128xf32>
    tpu.vector_store %arg8[%c0_58, %c0_59], %166 {strides = array<i32>} : memref<8x128xf32, #tpu.memory_space<vmem>>, vector<8x128xf32>,
    return
  }
  func.func @transform_0(%arg0: i32) -> (i32, i32) {
    %c0_i32 = arith.constant 0 : i32
    %c0_i32_0 = arith.constant 0 : i32
    return %arg0, %c0_i32 : i32, i32
  }
  func.func @transform_1(%arg0: i32) -> (i32, i32) {
    %c0_i32 = arith.constant 0 : i32
    %c0_i32_0 = arith.constant 0 : i32
    %c0_i32_1 = arith.constant 0 : i32
    return %c0_i32, %c0_i32_0 : i32, i32
  }
  func.func @transform_2(%arg0: i32) -> (i32, i32) {
    %c0_i32 = arith.constant 0 : i32
    %c0_i32_0 = arith.constant 0 : i32
    %c0_i32_1 = arith.constant 0 : i32
    return %c0_i32, %c0_i32_0 : i32, i32
  }
  func.func @transform_3(%arg0: i32) -> (i32, i32) {
    %c0_i32 = arith.constant 0 : i32
    %c0_i32_0 = arith.constant 0 : i32
    %c0_i32_1 = arith.constant 0 : i32
    return %c0_i32, %c0_i32_0 : i32, i32
  }
  func.func @transform_4(%arg0: i32) -> (i32, i32) {
    %c0_i32 = arith.constant 0 : i32
    %c0_i32_0 = arith.constant 0 : i32
    %c0_i32_1 = arith.constant 0 : i32
    return %c0_i32, %c0_i32_0 : i32, i32
  }
  func.func @transform_5(%arg0: i32) -> (i32, i32) {
    %c0_i32 = arith.constant 0 : i32
    %c0_i32_0 = arith.constant 0 : i32
    %c0_i32_1 = arith.constant 0 : i32
    return %c0_i32, %c0_i32_0 : i32, i32
  }
  func.func @transform_6(%arg0: i32) -> (i32, i32) {
    %c0_i32 = arith.constant 0 : i32
    %c0_i32_0 = arith.constant 0 : i32
    return %arg0, %c0_i32 : i32, i32
  }
  func.func @transform_7(%arg0: i32) -> (i32, i32) {
    %c0_i32 = arith.constant 0 : i32
    %c0_i32_0 = arith.constant 0 : i32
    %c0_i32_1 = arith.constant 0 : i32
    return %c0_i32, %c0_i32_0 : i32, i32
  }
}

</mosaic_0001>

<bundles_post_ra>
// kernel: tpu_custom_call.1
= control target key start
LH: loop header
LB: loop body
LE: loop exit
PB: predicated region body
PF: predicated region fallthrough
CT: control target
= control target key end

     0   :  { %13 = vsyncpa [#allocation5], 0  ;;  %s1892_s0 = inlined_call_operand.vmem [shape: bf16[64,8], index: 0, kind: input, shape index: {}]   ;;  %s1893_s1 = inlined_call_operand.vmem [shape: f32[8,128], index: 1, kind: input, shape index: {}]   ;;  %s1894_s2 = inlined_call_operand.vmem [shape: bf16[8,384], index: 2, kind: input, shape index: {}]   ;;  %s1895_s3 = inlined_call_operand.hbm [shape: bf16[128,384], index: 3, kind: input, shape index: {}]   ;;  %s1896_s4 = inlined_call_operand.vmem [shape: f32[1,384], index: 4, kind: input, shape index: {}]   ;;  %s1897_s5 = inlined_call_operand.vmem [shape: f32[1,128], index: 5, kind: input, shape index: {}]   ;;  %s1898_s6 = inlined_call_operand.hbm [shape: bf16[64,128], index: 6, kind: output, shape index: {0}]   ;;  %s1899_s7 = inlined_call_operand.hbm [shape: f32[8,128], index: 7, kind: output, shape index: {1}]  }
   0x1   :  { %14 = vsyncpa [#allocation6], 0 }
   0x2   :  { %16 = vsyncpa [#allocation6 + $0x1], 0 }
   0x3   :  { %17 = vsyncpa [#allocation9], 0  ;;  %s1542_s24 = smov 0   ;;  %s1544_s25 = smov 0  }
   0x4   :  { %s1546_s26 = smov 0   ;;  %s1548_s27 = smov 0  }
   0x5 LB: > { %s1563_s28 = sadd.s32 4294967295, %s1494_s27   ;;  %s1099_s29 = sadd.s32 4294967294, %s1494_s27   ;;  %s1494_s27 = sphi %s1548_s27, %s1905_s27   ;;  %s1490_s26 = sphi %s1546_s26, %s1904_s26   ;;  %s1486_s25 = sphi %s1544_s25, %s1903_s25   ;;  %s1482_s24 = sphi %s1542_s24, %s1902_s24  }
   0x6   : > { %s1567_s30 = sadd.s32 1, %s1494_s27   ;;  %s161_s8 = sadd.s32 1, %s1490_s26 }
   0x7   : > { %s158_s9 = ssub.s32 %s1494_s27, %s1567_s30  ;;  %p171_p0 = scmp.ne.s32.totalorder %s1490_s26, %s1486_s25 }
   0x8   : > { %p159_p1 = scmp.eq.s32.totalorder %s158_s9, 0  ;;  %p172_p2 = scmp.eq.s32.totalorder %s1563_s28, 1 }
   0x9   : > { %p177_p3 = scmp.ne.s32.totalorder %s1486_s25, %s1482_s24  ;;  %p178_p4 = scmp.eq.s32.totalorder %s1099_s29, 1 }
   0xa   : > { %s1578_s10 = scalar_select %p159_p1, %s1490_s26, %s161_s8  }
   0xb   : > { %p1582_p5 = por %p172_p2, %p171_p0  ;;  %p1586_p6 = por %p178_p4, %p177_p3 }
   0xc   : > { %p1100_p7 = scmp.ge.s32.totalorder %s1494_s27, 1  ;;  %p206_p8 = scmp.lt.s32.totalorder %s1494_s27, 3 }
   0xd   : > { %p1101_p9 = scmp.ne.s32.totalorder %s1563_s28, 0  ;;  %p1282_p10 = scmp.eq.s32.totalorder %s1563_s28, 0 }
   0xe   : > { %p207_p11 = pnand %p1100_p7, %p206_p8  ;;  %s223_s15 = sshll.u32 %s1895_s3, 4  ;;  %s224_s15 = int_to_ptr.hbm [resolvable:$true] %s223_s15 }
   0xf   : > { %s1496_s16 = smov [#allocation4]   ;;  %s1497_s18 = smov 192  }
  0x10   : > { %p1274_p12 = pneg %p207_p11  ;;  %s225_s17 = sshll.u32 %s1496_s16, 4  ;;  %s226_s17 = int_to_ptr.vmem [resolvable:$true] %s225_s17 }
  0x11   : > { %s1498_s19 = smov 12   ;;  %256 = sbr.rel (%p207_p11) target bundleno = 776 (0x308), region = 44 }
  0x12   : > { %p1275_p13 = pnand %p1282_p10, %p1274_p12 }
  0x14   : > { %1277 = dma.hbm_to_vmem [thread:$0]  (!%p1275_p13), %s224_s15, 3072, %s226_s17, [#allocation5], %s1497_s18, %s1497_s18, %s1498_s19  }
  0x16   : > { %1469 = dma.done.wait (%p1282_p10), [#allocation5], 3072  }
  0x17   : > { %1471 = vsyncadd (%p1282_p10), [#allocation5], 4294964224  ;;  %s284_s20 = sand.u32 1, %s1486_s25   ;;  %s1106_s21 = sshll.u32 %s1563_s28, 2 }
  0x18   : > { %s1105_s22 = sshll.u32 %s284_s20, 4  ;;  %p290_p0 = scmp.lt.s32.totalorder %s1106_s21, 7 }
  0x19   : > { %s1612_s13 = scalar_lea.vmem [#allocation7], %s1105_s22  ;;  %300 = sbr.rel (%p1101_p9) target bundleno = 32 (0x20), region = 52 }
  0x1a   : > { %s1907_s21 = smov (!%p290_p0, %s1106_s21), 7 }
  0x1b   : > { %s1107_s23 = sshll.u32 %s1907_s21, 2 }
  0x1c   : > { %s1610_s9 = scalar_lea.vmem %s1892_s0, %s1107_s23 }
  0x1e   : > { %v301_v0 = vld [vmem:[%s1893_s1] sm:$0xff] }
  0x1f   : > { %302 = vst [vmem:[#allocation3] sm:$0xff] %v301_v0 }
  0x20 PF: > { %v1209_v1 = vld [vmem:[#allocation4 + $0xa8] sm:$0xf]  ;;  %v1261_v2 = vld [vmem:[#allocation4 + $0xb0] sm:$0xf0]  ;;  %v307_v3 = vld [vmem:[%s1894_s2] sm:$0xff]  ;;  %vm342_vm0 = vcmask 1043456  }
  0x21   : > { %v1622_v4 = vor.u32 %v1261_v2, %v1209_v1  ;;  %v329_v5 = vunpack.c.l.b16 %v307_v3  ;;  %v1197_v6 = vld [vmem:[#allocation4 + $0x90] sm:$0xf]  ;;  %v1258_v7 = vld [vmem:[#allocation4 + $0x98] sm:$0xf0]  ;;  %v330_v8 = vunpack.c.h.b16 %v307_v3  ;;  %v1260_v9 = vld [vmem:[#allocation4 + $0xac] sm:$0xf] }
  0x22   : > { %v1211_v10 = vld [vmem:[#allocation4 + $0xb4] sm:$0xf0]  ;;  %v1625_v12 = vor.u32 %v1258_v7, %v1197_v6  ;;  %v1255_v16 = vld [vmem:[#allocation4 + $0x80] sm:$0xf0]  ;;  %v1257_v17 = vld [vmem:[#allocation4 + $0x94] sm:$0xf] }
  0x23   : > { %593 = vmatpush.bf16.msra.mxu3 %v1622_v4  ;;  %v332_v11 = vpack.c.b16 %v329_v5, %v329_v5  ;;  %v1627_v13 = vor.u32 %v1260_v9, %v1211_v10  ;;  %v1185_v14 = vld [vmem:[#allocation4 + $0x78] sm:$0xf]  ;;  %v333_v15 = vpack.c.b16 %v330_v8, %v330_v8  ;;  %v1199_v18 = vld [vmem:[#allocation4 + $0x9c] sm:$0xf0]  ;;  %vm335_vm1 = vcmask 64512   ;;  %s1263_s8 = sshll.u32 %s1563_s28, 4 }
  0x24   : > { %v1631_v20 = vld [vmem:[%s1610_s9] sm:$0xff]  ;;  %v1635_v21 = vor.u32 %v1255_v16, %v1185_v14  ;;  %v1637_v22 = vor.u32 %v1257_v17, %v1199_v18  ;;  %v1173_v23 = vld [vmem:[#allocation4 + $0x60] sm:$0xf]  ;;  %v1252_v25 = vld [vmem:[#allocation4 + $0x68] sm:$0xf0]  ;;  %s994_s15 = scalar_lea.hbm %s1898_s6, %s1263_s8  ;;  %s995_s16 = sshll.u32 %s1612_s13, 4  ;;  %s996_s16 = int_to_ptr.vmem [resolvable:$true] %s995_s16 }
  0x25   : > { %v344_v19 = vsel %vm342_vm0, %v332_v11, 0  ;;  %v347_v24 = vsel %vm342_vm0, %v333_v15, 0  ;;  %v1254_v26 = vld [vmem:[#allocation4 + $0x7c] sm:$0xf]  ;;  %v1187_v27 = vld [vmem:[#allocation4 + $0x84] sm:$0xf0]  ;;  %v1646_v31 = vor.u32 %v1252_v25, %v1173_v23 }
  0x26   : > { %359 = vmatpush.bf16.msra.mxu0 %v344_v19  ;;  %378 = vmatpush.bf16.msra.mxu1 %v347_v24  ;;  %v1217_v28 = vld [vmem:[#allocation4 + $0xb0] sm:$0xf]  ;;  %v1262_v29 = vld [vmem:[#allocation4 + $0xb8] sm:$0xf0]  ;;  %v1648_v32 = vor.u32 %v1254_v26, %v1187_v27  ;;  %v1161_v33 = vld [vmem:[#allocation4 + $0x48] sm:$0xf] }
  0x27   : > { %594 = vmatpush.bf16.msra.mxu3 %v1625_v12  ;;  %v1642_v30 = vor.u32 %v1262_v29, %v1217_v28  ;;  %v1205_v34 = vld [vmem:[#allocation4 + $0x98] sm:$0xf]  ;;  %v1259_v35 = vld [vmem:[#allocation4 + $0xa0] sm:$0xf0]  ;;  %v1249_v36 = vld [vmem:[#allocation4 + $0x50] sm:$0xf0] }
  0x28   : > { %v1251_v37 = vld [vmem:[#allocation4 + $0x64] sm:$0xf]  ;;  %v1175_v38 = vld [vmem:[#allocation4 + $0x6c] sm:$0xf0]  ;;  %v1653_v39 = vor.u32 %v1259_v35, %v1205_v34  ;;  %v1193_v40 = vld [vmem:[#allocation4 + $0x80] sm:$0xf]  ;;  %v1657_v42 = vor.u32 %v1249_v36, %v1161_v33 }
  0x29   : > { %1117 = vmatmul.msk.bf16.vlgmr.msra.gmra.mxu0 %vm335_vm1, %v1631_v20  ;;  %1119 = vmatmul.msk.bf16.vlgmr.msra.gmra.mxu1 %vm335_vm1, %v1631_v20  ;;  %v1256_v41 = vld [vmem:[#allocation4 + $0x88] sm:$0xf0]  ;;  %v1659_v43 = vor.u32 %v1251_v37, %v1175_v38  ;;  %v1149_v44 = vld [vmem:[#allocation4 + $0x30] sm:$0xf]  ;;  %v1246_v45 = vld [vmem:[#allocation4 + $0x38] sm:$0xf0] }
  0x2a   : > { %606 = vmatpush.bf16.msrb.mxu0 %v1627_v13  ;;  %619 = vmatpush.bf16.msrb.mxu1 %v1642_v30  ;;  %v1248_v46 = vld [vmem:[#allocation4 + $0x4c] sm:$0xf]  ;;  %v1163_v47 = vld [vmem:[#allocation4 + $0x54] sm:$0xf0]  ;;  %v308_v48 = vld [vmem:[%s1894_s2 + $0x8] sm:$0xf]  ;;  %v1665_v49 = vor.u32 %v1256_v41, %v1193_v40  ;;  %v1669_v53 = vor.u32 %v1246_v45, %v1149_v44 }
  0x2b   : > { %595 = vmatpush.bf16.msra.mxu3 %v1635_v21  ;;  %v1181_v50 = vld [vmem:[#allocation4 + $0x68] sm:$0xf]  ;;  %v331_v51 = vunpack.c.l.b16 %v308_v48  ;;  %v1253_v52 = vld [vmem:[#allocation4 + $0x70] sm:$0xf0]  ;;  %v1671_v54 = vor.u32 %v1248_v46, %v1163_v47  ;;  %v1137_v55 = vld [vmem:[#allocation4 + $0x18] sm:$0xf] }
  0x2c   : > { %v1243_v57 = vld [vmem:[#allocation4 + $0x20] sm:$0xf0]  ;;  %v1245_v58 = vld [vmem:[#allocation4 + $0x34] sm:$0xf]  ;;  %v1151_v59 = vld [vmem:[#allocation4 + $0x3c] sm:$0xf0]  ;;  %v1675_v61 = vor.u32 %v1253_v52, %v1181_v50 }
  0x2d   : > { %v334_v56 = vpack.c.b16 %v331_v51, %v331_v51  ;;  %v1238_v60 = vld [vmem:[%s1610_s9 + $0x8] sm:$0xff]  ;;  %v1169_v63 = vld [vmem:[#allocation4 + $0x50] sm:$0xf]  ;;  %v1250_v0 = vld [vmem:[#allocation4 + $0x58] sm:$0xf0]  ;;  %v1680_v1 = vor.u32 %v1243_v57, %v1137_v55  ;;  %v1682_v2 = vor.u32 %v1245_v58, %v1151_v59  ;;  %s997_s17 = sshll.u32 %s994_s15, 4  ;;  %s998_s17 = int_to_ptr.hbm [resolvable:$true] %s997_s17 }
  0x2e   : > { %607 = vmatpush.bf16.msrb.mxu0 %v1637_v22  ;;  %620 = vmatpush.bf16.msrb.mxu1 %v1653_v39  ;;  %v1125_v3 = vld [vmem:[#allocation4] sm:$0xf]  ;;  %v1240_v5 = vld [vmem:[#allocation4 + $0x8] sm:$0xf0]  ;;  %v1242_v6 = vld [vmem:[#allocation4 + $0x1c] sm:$0xf]  ;;  %v1687_v8 = vor.u32 %v1250_v0, %v1169_v63 }
  0x2f   : > { %596 = vmatpush.bf16.msra.mxu3 %v1646_v31  ;;  %v350_v62 = vsel %vm342_vm0, %v334_v56, 0  ;;  %v1139_v7 = vld [vmem:[#allocation4 + $0x24] sm:$0xf0]  ;;  %v1157_v9 = vld [vmem:[#allocation4 + $0x38] sm:$0xf]  ;;  %v1693_v11 = vor.u32 %v1240_v5, %v1125_v3  ;;  %s1499_s18 = smov [#allocation8]  }
  0x30   : > { %397 = vmatpush.bf16.msra.mxu2 %v350_v62  ;;  %v1247_v10 = vld [vmem:[#allocation4 + $0x40] sm:$0xf0]  ;;  %v1695_v14 = vld [vmem:[#allocation3] sm:$0xff]  ;;  %v1697_v15 = vor.u32 %v1242_v6, %v1139_v7  ;;  %v1127_v17 = vld [vmem:[#allocation4 + $0xc] sm:$0xf0]  ;;  %s1010_s19 = sshll.u32 %s1499_s18, 4  ;;  %s1011_s19 = int_to_ptr.vmem [resolvable:$true] %s1010_s19 }
  0x31   : > { %v1239_v16 = vld [vmem:[#allocation4 + $0x4] sm:$0xf]  ;;  %v1702_v18 = vor.u32 %v1247_v10, %v1157_v9  ;;  %v464_v19 = vpack.c.bf16 %v1695_v14, %v1695_v14  ;;  %v1244_v23 = vld [vmem:[#allocation4 + $0x28] sm:$0xf0]  ;;  %v1133_v26 = vld [vmem:[#allocation4 + $0x8] sm:$0xf] }
  0x32   : > { %608 = vmatpush.bf16.msrb.mxu0 %v1648_v32  ;;  %621 = vmatpush.bf16.msrb.mxu1 %v1665_v49  ;;  %v1708_v24 = vor.u32 %v1239_v16, %v1127_v17  ;;  %v1241_v27 = vld [vmem:[#allocation4 + $0x10] sm:$0xf0]  ;;  %v1806_v7 = vld [vmem:[%s1897_s5] ss:$0 sm:$0xff]  ;;  %s1012_s23 = sshll.u32 %s1899_s7, 4  ;;  %s983_s29 = scalar_lea.sflag [#allocation6], %s284_s20  ;;  %s1013_s23 = int_to_ptr.hbm [resolvable:$true] %s1012_s23 }
  0x33   : > { %597 = vmatpush.bf16.msra.mxu3 %v1657_v42  ;;  %1121 = vmatmul.msk.bf16.vlgmr.msra.gmra.mxu2 %vm335_vm1, %v1631_v20  ;;  %v1145_v20 = vld [vmem:[#allocation4 + $0x20] sm:$0xf]  ;;  %v1719_v28 = vor.u32 %v1241_v27, %v1133_v26  ;;  %s1438_s8 = sshra.s32 %s998_s17, 4  ;;  %s1444_s18 = scalar_lea.hbm %s1898_s6, 32  ;;  %s1439_s8 = int_to_ptr.hbm [resolvable:$true] %s1438_s8 }
  0x34   : > { %691 = vmatpush.bf16.msrb.mxu2 %v1622_v4  ;;  %v1713_v25 = vor.u32 %v1244_v23, %v1145_v20  ;;  %s1440_s9 = scalar_lea.hbm %s1439_s8, 16  ;;  %p1445_p7 = scmp.lt.s32.totalorder %s1439_s8, %s1898_s6 }
  0x35   : > { %p1441_p1 = scmp.ne.s32.totalorder %s1439_s8, %s1440_s9  ;;  %p1446_p8 = scmp.lt.s32.totalorder %s1444_s18, %s1440_s9 }
  0x36   : > { %609 = vmatpush.bf16.msrb.mxu0 %v1659_v43  ;;  %622 = vmatpush.bf16.msrb.mxu1 %v1675_v61 }
  0x37   : > { %598 = vmatpush.bf16.msra.mxu3 %v1669_v53  ;;  %p1442_p3 = pnand %p1441_p1, %p1582_p5  ;;  %p1447_p9 = por %p1446_p8, %p1445_p7 }
  0x38   : > { %692 = vmatpush.bf16.msrb.mxu2 %v1625_v12 }
  0x39   : > { %1118 = vmatmul.msk.bf16.gmra.mxu0 %vm335_vm1, %v1238_v60  ;;  %1120 = vmatmul.msk.bf16.gmra.mxu1 %vm335_vm1, %v1238_v60  ;;  %p1443_p4 = pneg %p1442_p3 }
  0x3a   : > { %610 = vmatpush.bf16.msrb.mxu0 %v1671_v54  ;;  %623 = vmatpush.bf16.msrb.mxu1 %v1687_v8 }
  0x3b   : > { %599 = vmatpush.bf16.msra.mxu3 %v1680_v1  ;;  %p1448_p10 = pnand %p1447_p9, %p1443_p4 }
  0x3c   : > { %693 = vmatpush.bf16.msrb.mxu2 %v1635_v21 }
  0x3e   : > { %611 = vmatpush.bf16.msrb.mxu0 %v1682_v2  ;;  %624 = vmatpush.bf16.msrb.mxu1 %v1702_v18 }
  0x3f   : > { %600 = vmatpush.bf16.msra.mxu3 %v1693_v11 }
  0x40   : > { %694 = vmatpush.bf16.msrb.mxu2 %v1646_v31 }
  0x42   : > { %612 = vmatpush.bf16.msrb.mxu0 %v1697_v15  ;;  %601 = vmatmul.bf16.vlgmr.msra.gmra.mxu3 %v464_v19 }
  0x43   : > { %704 = vmatpush.bf16.msrb.mxu3 %v1627_v13  ;;  %625 = vmatpush.bf16.msrb.mxu1 %v1713_v25 }
  0x44   : > { %1122 = vmatmul.msk.bf16.gmra.mxu2 %vm335_vm1, %v1238_v60 }
  0x45   : > { %695 = vmatpush.bf16.msrb.mxu2 %v1657_v42 }
  0x46   : > { %613 = vmatpush.bf16.msrb.mxu0 %v1708_v24 }
  0x47   : > { %705 = vmatpush.bf16.msrb.mxu3 %v1637_v22  ;;  %626 = vmatpush.bf16.msrb.mxu1 %v1719_v28 }
  0x49   : > { %614 = vmatmul.bf16.vlgmr.msrb.gmra.mxu0 %v464_v19  ;;  %696 = vmatpush.bf16.msrb.mxu2 %v1669_v53 }
  0x4a   : > { %717 = vmatpush.bf16.msra.mxu0 %v1642_v30  ;;  %627 = vmatmul.bf16.vlgmr.msrb.gmra.mxu1 %v464_v19 }
  0x4b   : > { %706 = vmatpush.bf16.msrb.mxu3 %v1648_v32  ;;  %790 = vmatpush.bf16.msra.mxu1 %v1622_v4 }
  0x4d   : > { %697 = vmatpush.bf16.msrb.mxu2 %v1680_v1 }
  0x4e   : > { %718 = vmatpush.bf16.msra.mxu0 %v1653_v39 }
  0x4f   : > { %707 = vmatpush.bf16.msrb.mxu3 %v1659_v43  ;;  %791 = vmatpush.bf16.msra.mxu1 %v1625_v12 }
  0x51   : > { %698 = vmatpush.bf16.msrb.mxu2 %v1693_v11 }
  0x52   : > { %719 = vmatpush.bf16.msra.mxu0 %v1665_v49 }
  0x53   : > { %708 = vmatpush.bf16.msrb.mxu3 %v1671_v54  ;;  %792 = vmatpush.bf16.msra.mxu1 %v1635_v21 }
  0x55   : > { %803 = vmatpush.bf16.msra.mxu2 %v1627_v13 }
  0x56   : > { %720 = vmatpush.bf16.msra.mxu0 %v1675_v61 }
  0x57   : > { %709 = vmatpush.bf16.msrb.mxu3 %v1682_v2  ;;  %793 = vmatpush.bf16.msra.mxu1 %v1646_v31 }
  0x59   : > { %804 = vmatpush.bf16.msra.mxu2 %v1637_v22 }
  0x5a   : > { %721 = vmatpush.bf16.msra.mxu0 %v1687_v8 }
  0x5b   : > { %710 = vmatpush.bf16.msrb.mxu3 %v1697_v15  ;;  %794 = vmatpush.bf16.msra.mxu1 %v1657_v42 }
  0x5d   : > { %805 = vmatpush.bf16.msra.mxu2 %v1648_v32 }
  0x5e   : > { %722 = vmatpush.bf16.msra.mxu0 %v1702_v18 }
  0x5f   : > { %711 = vmatpush.bf16.msrb.mxu3 %v1708_v24  ;;  %795 = vmatpush.bf16.msra.mxu1 %v1669_v53 }
  0x61   : > { %806 = vmatpush.bf16.msra.mxu2 %v1659_v43 }
  0x62   : > { %723 = vmatpush.bf16.msra.mxu0 %v1713_v25 }
  0x63   : > { %816 = vmatpush.bf16.msra.mxu3 %v1642_v30  ;;  %796 = vmatpush.bf16.msra.mxu1 %v1680_v1 }
  0x65   : > { %807 = vmatpush.bf16.msra.mxu2 %v1671_v54 }
  0x66   : > { %724 = vmatpush.bf16.msra.mxu0 %v1719_v28 }
  0x67   : > { %817 = vmatpush.bf16.msra.mxu3 %v1653_v39  ;;  %797 = vmatpush.bf16.msra.mxu1 %v1693_v11 }
  0x69   : > { %808 = vmatpush.bf16.msra.mxu2 %v1682_v2 }
  0x6a   : > { %889 = vmatpush.bf16.msrb.mxu0 %v1622_v4 }
  0x6b   : > { %818 = vmatpush.bf16.msra.mxu3 %v1665_v49  ;;  %902 = vmatpush.bf16.msrb.mxu1 %v1627_v13 }
  0x6d   : > { %809 = vmatpush.bf16.msra.mxu2 %v1697_v15 }
  0x6e   : > { %890 = vmatpush.bf16.msrb.mxu0 %v1625_v12  ;;  %v309_v12 = vld [vmem:[%s1896_s4] sm:$0x7] }
  0x6f   : > { %819 = vmatpush.bf16.msra.mxu3 %v1675_v61  ;;  %903 = vmatpush.bf16.msrb.mxu1 %v1637_v22  ;;  %v312_v29 = vperm.slane %v309_v12, 1  ;;  %v1798_v63 = vperm.slane %v309_v12, 2 }
  0x71   : > { %810 = vmatpush.bf16.msra.mxu2 %v1708_v24 }
  0x72   : > { %891 = vmatpush.bf16.msrb.mxu0 %v1635_v21  ;;  %v311_v21 = vperm.slane %v309_v12, 0 }
  0x73   : > { %820 = vmatpush.bf16.msra.mxu3 %v1687_v8  ;;  %904 = vmatpush.bf16.msrb.mxu1 %v1648_v32 }
  0x76   : > { %892 = vmatpush.bf16.msrb.mxu0 %v1646_v31 }
  0x77   : > { %821 = vmatpush.bf16.msra.mxu3 %v1702_v18  ;;  %905 = vmatpush.bf16.msrb.mxu1 %v1659_v43 }
  0x7a   : > { %893 = vmatpush.bf16.msrb.mxu0 %v1657_v42 }
  0x7b   : > { %822 = vmatpush.bf16.msra.mxu3 %v1713_v25  ;;  %906 = vmatpush.bf16.msrb.mxu1 %v1671_v54 }
  0x7e   : > { %894 = vmatpush.bf16.msrb.mxu0 %v1669_v53 }
  0x7f   : > { %823 = vmatpush.bf16.msra.mxu3 %v1719_v28  ;;  %907 = vmatpush.bf16.msrb.mxu1 %v1682_v2 }
  0x82   : > { %895 = vmatpush.bf16.msrb.mxu0 %v1680_v1 }
  0x83   : > { %908 = vmatpush.bf16.msrb.mxu1 %v1697_v15 }
  0x86   : > { %896 = vmatpush.bf16.msrb.mxu0 %v1693_v11 }
  0x87   : > { %909 = vmatpush.bf16.msrb.mxu1 %v1708_v24 }
  0xa6   : > { %v361_v4 = vpop.f32.mrf.mxu0  ;;  %v380_v13 = vpop.f32.mrf.mxu1 }
  0xa7   : > { %v362_v43 = vadd.f32 %v361_v4, %v311_v21  ;;  %v381_v45 = vadd.f32 %v380_v13, %v312_v29 }
  0xae   : > { %v363_v22 = vpop.f32.mrf.mxu0  ;;  %v382_v32 = vpop.f32.mrf.mxu1 }
  0xaf   : > { %v1784_v31 = vadd.f32 %v363_v22, %v311_v21  ;;  %v1786_v33 = vadd.f32 %v382_v32, %v312_v29 }
  0xb6   : > { %v366_v34 = vpop.f32.mrf.mxu0  ;;  %v385_v36 = vpop.f32.mrf.mxu1 }
  0xb7   : > { %v1788_v35 = vadd.f32 %v366_v34, %v311_v21  ;;  %v1790_v37 = vadd.f32 %v385_v36, %v312_v29  ;;  %v399_v44 = vpop.f32.mrf.mxu2 }
  0xb8   : > { %v400_v26 = vadd.f32 %v399_v44, %v1798_v63 }
  0xbe   : > { %v368_v38 = vpop.f32.mrf.mxu0  ;;  %v387_v41 = vpop.f32.mrf.mxu1 }
  0xbf   : > { %v1792_v40 = vadd.f32 %v368_v38, %v311_v21  ;;  %v1794_v42 = vadd.f32 %v387_v41, %v312_v29  ;;  %v1796_v56 = vpop.f32.mrf.mxu2 }
  0xc5   : > { %v602_v46 = vpop.f32.mrf.mxu3 }
  0xc6   : > { %v632_v47 = vadd.f32 %v602_v46, %v362_v43  ;;  %v615_v48 = vpop.f32.mrf.mxu0 }
  0xc7   : > { %v652_v50 = vadd.f32 %v615_v48, %v381_v45  ;;  %v628_v53 = vpop.f32.mrf.mxu1  ;;  %v404_v0 = vpop.f32.mrf.mxu2 }
  0xc8   : > { %v1219_v51 = vmul.f32 -1.442695, %v632_v47  ;;  %v1801_v1 = vadd.f32 %v404_v0, %v1798_v63  ;;  %v672_v20 = vadd.f32 %v1806_v7, %v628_v53 }
  0xc9   : > { %v1220_v52 = vmul.f32 -1.442695, %v652_v50 }
  0xca   : > { %1326 = vpow2.f32 %v1219_v51 }
  0xcb   : > { %1328 = vpow2.f32 %v1220_v52 }
  0xcd   : > { %v604_v54 = vpop.f32.mrf.mxu3 }
  0xce   : > { %v617_v55 = vpop.f32.mrf.mxu0 }
  0xcf   : > { %v630_v60 = vpop.f32.mrf.mxu1 }
  0xd0   : > { %v1327_v57 = vpop.eup %1326 }
  0xd1   : > { %v1329_v58 = vpop.eup %1328  ;;  %v636_v59 = vadd.f32 1.0, %v1327_v57 }
  0xd2   : > { %v656_v62 = vadd.f32 1.0, %v1329_v58 }
  0xd3   : > { %1330 = vrcp.f32 %v636_v59  ;;  %v648_v11 = vand.u32 2147483648, %v636_v59  ;;  %v646_v16 = vand.u32 2147483647, %v636_v59  ;;  %vm642_vm3 = vweird.f32 %v636_v59 }
  0xd4   : > { %1332 = vrcp.f32 %v656_v62  ;;  %v668_v12 = vand.u32 2147483648, %v656_v62  ;;  %vm662_vm7 = vweird.f32 %v656_v62  ;;  %v666_v21 = vand.u32 2147483647, %v656_v62 }
  0xd5   : > { %v649_v23 = vor.u32 1.1754944e-38, %v648_v11  ;;  %vm647_vm5 = vcmp.eq.f32.partialorder %v646_v16, 8.507059e+37 }
  0xd6   : > { %v669_v32 = vor.u32 1.1754944e-38, %v668_v12  ;;  %vm667_vm9 = vcmp.eq.f32.partialorder %v666_v21, 8.507059e+37 }
  0xd9   : > { %v1331_v2 = vpop.eup %1330 }
  0xda   : > { %v1333_v3 = vpop.eup %1332  ;;  %v638_v5 = vmul.f32 %v1331_v2, %v636_v59  ;;  %vm643_vm2 = vweird.f32 %v1331_v2 }
  0xdb   : > { %v658_v6 = vmul.f32 %v1333_v3, %v656_v62  ;;  %vm644_vm4 = vmor %vm642_vm3, %vm643_vm2  ;;  %vm663_vm6 = vweird.f32 %v1333_v3 }
  0xdc   : > { %v639_v9 = vsub.f32 1.0, %v638_v5  ;;  %vm664_vm8 = vmor %vm662_vm7, %vm663_vm6 }
  0xdd   : > { %v659_v10 = vsub.f32 1.0, %v658_v6 }
  0xde   : > { %v640_v15 = vmul.f32 %v1331_v2, %v639_v9 }
  0xdf   : > { %v660_v17 = vmul.f32 %v1333_v3, %v659_v10  ;;  %v402_v10 = vadd.f32 %v1796_v56, %v1798_v63 }
  0xe0   : > { %v641_v19 = vadd.f32 %v1331_v2, %v640_v15 }
  0xe1   : > { %v661_v4 = vadd.f32 %v1333_v3, %v660_v17 }
  0xe2   : > { %v645_v24 = vsel %vm644_vm4, %v1331_v2, %v641_v19 }
  0xe3   : > { %v650_v27 = vsel %vm647_vm5, %v649_v23, %v645_v24  ;;  %v665_v29 = vsel %vm664_vm8, %v1333_v3, %v661_v4 }
  0xe4   : > { %v673_v13 = vmul.f32 %v672_v20, %v650_v27  ;;  %v670_v34 = vsel %vm667_vm9, %v669_v32, %v665_v29 }
  0xe5   : > { %v676_v36 = vsub.f32 1.0, %v670_v34  ;;  %v678_v43 = vmul.f32 %v670_v34, %v1695_v14  ;;  %v1824_v14 = vpop.f32.mrf.mxu2 }
  0xe6   : > { %v674_v22 = vadd.f32 %v673_v13, %v400_v26 }
  0xe8   : > { %1334 = vtanh.f32 %v674_v22 }
  0xee   : > { %v1335_v38 = vpop.eup %1334 }
  0xef   : > { %v677_v41 = vmul.f32 %v1335_v38, %v676_v36 }
  0xf1   : > { %v1811_v44 = vadd.f32 %v678_v43, %v677_v41 }
  0xf3   : > { %v681_v45 = vpack.c.bf16 %v1811_v44, %v1811_v44 }
  0xf5   : > { %682 = vst [vmem:[%s1612_s13] sm:$0xf] %v681_v45  ;;  %699 = vmatmul.bf16.vlgmr.msrb.gmra.mxu2 %v681_v45  ;;  %712 = vmatmul.bf16.vlgmr.msrb.gmra.mxu3 %v681_v45 }
  0xf6   : > { %725 = vmatmul.bf16.vlgmr.msra.gmra.mxu0 %v681_v45  ;;  %915 = vmatpush.bf16.msrb.mxu2 %v1642_v30 }
  0xfa   : > { %916 = vmatpush.bf16.msrb.mxu2 %v1653_v39 }
  0xfe   : > { %917 = vmatpush.bf16.msrb.mxu2 %v1665_v49 }
 0x102   : > { %918 = vmatpush.bf16.msrb.mxu2 %v1675_v61 }
 0x106   : > { %919 = vmatpush.bf16.msrb.mxu2 %v1687_v8 }
 0x10a   : > { %920 = vmatpush.bf16.msrb.mxu2 %v1702_v18 }
 0x10e   : > { %921 = vmatpush.bf16.msrb.mxu2 %v1713_v25 }
 0x112   : > { %922 = vmatpush.bf16.msrb.mxu2 %v1719_v28 }
 0x173   : > { %v726_v46 = vpop.f32.mrf.mxu0 }
 0x174   : > { %v770_v3 = vadd.f32 %v1806_v7, %v726_v46 }
 0x178   : > { %v700_v47 = vpop.f32.mrf.mxu2  ;;  %v713_v48 = vpop.f32.mrf.mxu3 }
 0x179   : > { %v730_v30 = vadd.f32 %v700_v47, %v1784_v31  ;;  %v750_v39 = vadd.f32 %v713_v48, %v1786_v33 }
 0x17b   : > { %v1221_v49 = vmul.f32 -1.442695, %v730_v30  ;;  %v1222_v50 = vmul.f32 -1.442695, %v750_v39  ;;  %v728_v61 = vpop.f32.mrf.mxu0 }
 0x17d   : > { %1336 = vpow2.f32 %v1221_v49 }
 0x17e   : > { %1338 = vpow2.f32 %v1222_v50 }
 0x180   : > { %v702_v8 = vpop.f32.mrf.mxu2  ;;  %v715_v18 = vpop.f32.mrf.mxu3 }
 0x183   : > { %v1337_v51 = vpop.eup %1336 }
 0x184   : > { %v1339_v25 = vpop.eup %1338  ;;  %v734_v52 = vadd.f32 1.0, %v1337_v51 }
 0x185   : > { %v754_v28 = vadd.f32 1.0, %v1339_v25 }
 0x186   : > { %1340 = vrcp.f32 %v734_v52  ;;  %v746_v58 = vand.u32 2147483648, %v734_v52  ;;  %v744_v60 = vand.u32 2147483647, %v734_v52  ;;  %vm740_vm11 = vweird.f32 %v734_v52 }
 0x187   : > { %1342 = vrcp.f32 %v754_v28  ;;  %v766_v15 = vand.u32 2147483648, %v754_v28  ;;  %vm760_vm15 = vweird.f32 %v754_v28  ;;  %v764_v16 = vand.u32 2147483647, %v754_v28 }
 0x188   : > { %v747_v2 = vor.u32 1.1754944e-38, %v746_v58  ;;  %vm745_vm13 = vcmp.eq.f32.partialorder %v744_v60, 8.507059e+37 }
 0x189   : > { %v767_v20 = vor.u32 1.1754944e-38, %v766_v15  ;;  %vm765_vm1 = vcmp.eq.f32.partialorder %v764_v16, 8.507059e+37 }
 0x18c   : > { %v1341_v53 = vpop.eup %1340 }
 0x18d   : > { %v1343_v54 = vpop.eup %1342  ;;  %v736_v55 = vmul.f32 %v1341_v53, %v734_v52  ;;  %vm741_vm10 = vweird.f32 %v1341_v53 }
 0x18e   : > { %v756_v57 = vmul.f32 %v1343_v54, %v754_v28  ;;  %vm742_vm12 = vmor %vm740_vm11, %vm741_vm10  ;;  %vm761_vm14 = vweird.f32 %v1343_v54 }
 0x18f   : > { %v737_v31 = vsub.f32 1.0, %v736_v55  ;;  %vm762_vm0 = vmor %vm760_vm15, %vm761_vm14 }
 0x190   : > { %v757_v33 = vsub.f32 1.0, %v756_v57 }
 0x191   : > { %v738_v59 = vmul.f32 %v1341_v53, %v737_v31 }
 0x192   : > { %v758_v62 = vmul.f32 %v1343_v54, %v757_v33 }
 0x193   : > { %v739_v0 = vadd.f32 %v1341_v53, %v738_v59 }
 0x194   : > { %v759_v9 = vadd.f32 %v1343_v54, %v758_v62 }
 0x195   : > { %v743_v5 = vsel %vm742_vm12, %v1341_v53, %v739_v0 }
 0x196   : > { %v748_v6 = vsel %vm745_vm13, %v747_v2, %v743_v5  ;;  %v763_v19 = vsel %vm762_vm0, %v1343_v54, %v759_v9 }
 0x197   : > { %v771_v11 = vmul.f32 %v770_v3, %v748_v6  ;;  %v768_v23 = vsel %vm765_vm1, %v767_v20, %v763_v19 }
 0x198   : > { %v774_v24 = vsub.f32 1.0, %v768_v23  ;;  %v776_v4 = vmul.f32 %v768_v23, %v1811_v44 }
 0x199   : > { %v772_v17 = vadd.f32 %v771_v11, %v402_v10 }
 0x19b   : > { %1344 = vtanh.f32 %v772_v17 }
 0x1a1   : > { %v1345_v26 = vpop.eup %1344 }
 0x1a2   : > { %v775_v27 = vmul.f32 %v1345_v26, %v774_v24 }
 0x1a4   : > { %v777_v12 = vadd.f32 %v776_v4, %v775_v27 }
 0x1a6   : > { %v789_v13 = vpack.c.bf16 %v777_v12, %v777_v12 }
 0x1a8   : > { %798 = vmatmul.bf16.vlgmr.msra.gmra.mxu1 %v789_v13  ;;  %811 = vmatmul.bf16.vlgmr.msra.gmra.mxu2 %v789_v13  ;;  %1223 = vst [vmem:[%s1612_s13 + $0x4] sm:$0xf] %v789_v13 }
 0x1a9   : > { %824 = vmatmul.bf16.vlgmr.msra.gmra.mxu3 %v789_v13 }
 0x225   : > { %v799_v56 = vpop.f32.mrf.mxu1 }
 0x226   : > { %v829_v21 = vadd.f32 %v799_v56, %v1788_v35 }
 0x228   : > { %v1224_v22 = vmul.f32 -1.442695, %v829_v21 }
 0x22a   : > { %1346 = vpow2.f32 %v1224_v22 }
 0x22b   : > { %v812_v29 = vpop.f32.mrf.mxu2 }
 0x22c   : > { %v849_v32 = vadd.f32 %v812_v29, %v1790_v37  ;;  %v825_v34 = vpop.f32.mrf.mxu3 }
 0x22d   : > { %v801_v36 = vpop.f32.mrf.mxu1  ;;  %v869_v52 = vadd.f32 %v1806_v7, %v825_v34 }
 0x22e   : > { %v1225_v38 = vmul.f32 -1.442695, %v849_v32 }
 0x230   : > { %v1347_v41 = vpop.eup %1346  ;;  %1348 = vpow2.f32 %v1225_v38 }
 0x231   : > { %v833_v43 = vadd.f32 1.0, %v1347_v41 }
 0x233   : > { %1350 = vrcp.f32 %v833_v43  ;;  %v814_v44 = vpop.f32.mrf.mxu2  ;;  %v845_v39 = vand.u32 2147483648, %v833_v43  ;;  %v843_v50 = vand.u32 2147483647, %v833_v43  ;;  %vm839_vm3 = vweird.f32 %v833_v43 }
 0x234   : > { %v827_v45 = vpop.f32.mrf.mxu3 }
 0x235   : > { %v846_v18 = vor.u32 1.1754944e-38, %v845_v39  ;;  %vm844_vm5 = vcmp.eq.f32.partialorder %v843_v50, 8.507059e+37 }
 0x236   : > { %v1349_v46 = vpop.eup %1348 }
 0x237   : > { %v853_v47 = vadd.f32 1.0, %v1349_v46  ;;  %v407_v46 = vadd.f32 %v1824_v14, %v1798_v63 }
 0x239   : > { %v1351_v48 = vpop.eup %1350  ;;  %1352 = vrcp.f32 %v853_v47  ;;  %v865_v54 = vand.u32 2147483648, %v853_v47  ;;  %v863_v57 = vand.u32 2147483647, %v853_v47  ;;  %vm859_vm7 = vweird.f32 %v853_v47 }
 0x23a   : > { %v835_v30 = vmul.f32 %v1351_v48, %v833_v43  ;;  %vm840_vm2 = vweird.f32 %v1351_v48 }
 0x23b   : > { %vm841_vm4 = vmor %vm839_vm3, %vm840_vm2  ;;  %v866_v33 = vor.u32 1.1754944e-38, %v865_v54  ;;  %vm864_vm9 = vcmp.eq.f32.partialorder %v863_v57, 8.507059e+37 }
 0x23c   : > { %v836_v35 = vsub.f32 1.0, %v835_v30 }
 0x23e   : > { %v837_v49 = vmul.f32 %v1351_v48, %v836_v35 }
 0x23f   : > { %v1353_v37 = vpop.eup %1352 }
 0x240   : > { %v855_v61 = vmul.f32 %v1353_v37, %v853_v47  ;;  %v838_v8 = vadd.f32 %v1351_v48, %v837_v49  ;;  %vm860_vm6 = vweird.f32 %v1353_v37 }
 0x241   : > { %vm861_vm8 = vmor %vm859_vm7, %vm860_vm6 }
 0x242   : > { %v856_v51 = vsub.f32 1.0, %v855_v61  ;;  %v842_v25 = vsel %vm841_vm4, %v1351_v48, %v838_v8 }
 0x243   : > { %v847_v28 = vsel %vm844_vm5, %v846_v18, %v842_v25 }
 0x244   : > { %v857_v53 = vmul.f32 %v1353_v37, %v856_v51  ;;  %v870_v55 = vmul.f32 %v869_v52, %v847_v28 }
 0x246   : > { %v858_v31 = vadd.f32 %v1353_v37, %v857_v53  ;;  %v871_v58 = vadd.f32 %v870_v55, %v1801_v1 }
 0x248   : > { %v862_v59 = vsel %vm861_vm8, %v1353_v37, %v858_v31  ;;  %1354 = vtanh.f32 %v871_v58 }
 0x249   : > { %v867_v60 = vsel %vm864_vm9, %v866_v33, %v862_v59 }
 0x24a   : > { %v873_v62 = vsub.f32 1.0, %v867_v60  ;;  %v875_v3 = vmul.f32 %v867_v60, %v777_v12 }
 0x24e   : > { %v1355_v0 = vpop.eup %1354 }
 0x24f   : > { %v874_v2 = vmul.f32 %v1355_v0, %v873_v62 }
 0x251   : > { %v1837_v5 = vadd.f32 %v875_v3, %v874_v2 }
 0x253   : > { %v878_v6 = vpack.c.bf16 %v1837_v5, %v1837_v5 }
 0x255   : > { %1226 = vst [vmem:[%s1612_s13 + $0x8] sm:$0xf] %v878_v6  ;;  %897 = vmatmul.bf16.vlgmr.msrb.gmra.mxu0 %v878_v6  ;;  %910 = vmatmul.bf16.vlgmr.msrb.gmra.mxu1 %v878_v6 }
 0x256   : > { %923 = vmatmul.bf16.vlgmr.msrb.gmra.mxu2 %v878_v6 }
 0x2d2   : > { %v898_v1 = vpop.f32.mrf.mxu0  ;;  %v911_v9 = vpop.f32.mrf.mxu1 }
 0x2d3   : > { %v928_v10 = vadd.f32 %v898_v1, %v1792_v40  ;;  %v948_v11 = vadd.f32 %v911_v9, %v1794_v42 }
 0x2d5   : > { %v1227_v15 = vmul.f32 -1.442695, %v928_v10  ;;  %v1228_v16 = vmul.f32 -1.442695, %v948_v11 }
 0x2d7   : > { %1356 = vpow2.f32 %v1227_v15 }
 0x2d8   : > { %1358 = vpow2.f32 %v1228_v16 }
 0x2d9   : > { %v924_v17 = vpop.f32.mrf.mxu2 }
 0x2da   : > { %v900_v19 = vpop.f32.mrf.mxu0  ;;  %v913_v20 = vpop.f32.mrf.mxu1  ;;  %v968_v43 = vadd.f32 %v1806_v7, %v924_v17 }
 0x2dd   : > { %v1357_v23 = vpop.eup %1356 }
 0x2de   : > { %v1359_v24 = vpop.eup %1358  ;;  %v932_v26 = vadd.f32 1.0, %v1357_v23 }
 0x2df   : > { %v952_v27 = vadd.f32 1.0, %v1359_v24 }
 0x2e0   : > { %1360 = vrcp.f32 %v932_v26  ;;  %v944_v22 = vand.u32 2147483648, %v932_v26  ;;  %v942_v32 = vand.u32 2147483647, %v932_v26  ;;  %vm938_vm11 = vweird.f32 %v932_v26 }
 0x2e1   : > { %1362 = vrcp.f32 %v952_v27  ;;  %v926_v4 = vpop.f32.mrf.mxu2  ;;  %v964_v47 = vand.u32 2147483648, %v952_v27  ;;  %vm958_vm15 = vweird.f32 %v952_v27  ;;  %v962_v30 = vand.u32 2147483647, %v952_v27 }
 0x2e2   : > { %v945_v38 = vor.u32 1.1754944e-38, %v944_v22  ;;  %vm943_vm13 = vcmp.eq.f32.partialorder %v942_v32, 8.507059e+37 }
 0x2e3   : > { %v965_v49 = vor.u32 1.1754944e-38, %v964_v47  ;;  %vm963_vm1 = vcmp.eq.f32.partialorder %v962_v30, 8.507059e+37 }
 0x2e6   : > { %v1361_v12 = vpop.eup %1360 }
 0x2e7   : > { %v1363_v13 = vpop.eup %1362  ;;  %v934_v56 = vmul.f32 %v1361_v12, %v932_v26  ;;  %vm939_vm10 = vweird.f32 %v1361_v12 }
 0x2e8   : > { %v954_v40 = vmul.f32 %v1363_v13, %v952_v27  ;;  %vm940_vm12 = vmor %vm938_vm11, %vm939_vm10  ;;  %vm959_vm14 = vweird.f32 %v1363_v13 }
 0x2e9   : > { %v935_v21 = vsub.f32 1.0, %v934_v56  ;;  %vm960_vm0 = vmor %vm958_vm15, %vm959_vm14 }
 0x2ea   : > { %v955_v42 = vsub.f32 1.0, %v954_v40 }
 0x2eb   : > { %v936_v29 = vmul.f32 %v1361_v12, %v935_v21 }
 0x2ec   : > { %v956_v34 = vmul.f32 %v1363_v13, %v955_v42 }
 0x2ed   : > { %v937_v36 = vadd.f32 %v1361_v12, %v936_v29 }
 0x2ee   : > { %v957_v44 = vadd.f32 %v1363_v13, %v956_v34 }
 0x2ef   : > { %v941_v41 = vsel %vm940_vm12, %v1361_v12, %v937_v36 }
 0x2f0   : > { %v946_v45 = vsel %vm943_vm13, %v945_v38, %v941_v41  ;;  %v961_v39 = vsel %vm960_vm0, %v1363_v13, %v957_v44 }
 0x2f1   : > { %v969_v48 = vmul.f32 %v968_v43, %v946_v45  ;;  %v966_v50 = vsel %vm963_vm1, %v965_v49, %v961_v39 }
 0x2f2   : > { %v972_v7 = vsub.f32 1.0, %v966_v50  ;;  %v974_v14 = vmul.f32 %v966_v50, %v1837_v5 }
 0x2f3   : > { %v970_v35 = vadd.f32 %v969_v48, %v407_v46 }
 0x2f5   : > { %1364 = vtanh.f32 %v970_v35 }
 0x2fb   : > { %v1365_v37 = vpop.eup %1364 }
 0x2fc   : > { %v973_v63 = vmul.f32 %v1365_v37, %v972_v7 }
 0x2fe   : > { %v975_v61 = vadd.f32 %v974_v14, %v973_v63 }
 0x300   : > { %976 = vst [vmem:[#allocation3] sm:$0xff] %v975_v61  ;;  %v977_v8 = vpack.c.bf16 %v975_v61, %v975_v61 }
 0x301   : > { %981 = vst [vmem:[#allocation8] sm:$0xff] %v975_v61 }
 0x302   : > { %1229 = vst [vmem:[%s1612_s13 + $0xc] sm:$0xf] %v977_v8  ;;  %1270 = dma.vmem_to_hbm [thread:$0]  (%p172_p2), %s1011_s19, 128, %s1013_s23, [#allocation9]  }
 0x303   : > { %1451 = shalt.err (!%p1448_p10)
}
 0x304   : > { %s1500_s20 = smov 64   ;;  %s1501_s13 = smov 4  }
 0x305   : > { %1268 = dma.vmem_to_hbm [thread:$0]  (%p1582_p5), %s996_s16, 256, %s998_s17, %s983_s29, %s1500_s20, %s1500_s20, %s1501_s13  }
 0x306   : > { %1473 = dma.done.wait (%p172_p2), [#allocation9], 128  }
 0x307   : > { %1475 = vsyncadd (%p172_p2), [#allocation9], 4294967168 }
 0x308 PF: > { %p1286_p11 = scmp.ge.s32.totalorder %s1494_s27, 2  ;;  %s1029_s19 = sand.u32 1, %s1482_s24  }
 0x309   : > { %s1030_s23 = scalar_lea.sflag [#allocation6], %s1029_s19 }
 0x30a   : > { %p1279_p12 = pnand %p1286_p11, %p1586_p6 }
 0x30c   : > { %p1280_p13 = pneg %p1279_p12 }
 0x30e   : > { %1477 = dma.done.wait (%p1280_p13), %s1030_s23, 256  }
 0x30f   : > { %1479 = vsyncadd (%p1280_p13), %s1030_s23, 4294967040  ;;  %p20_p5 = scmp.ge.s32.totalorder %s1567_s30, 4   ;;  %s1902_s24 = smov %s1486_s25 }
 0x310   : > { %s1903_s25 = smov %s1490_s26  ;;  %s1904_s26 = smov %s1578_s10 }
 0x311   : > { %s1905_s27 = smov %s1567_s30  ;;  %22 = sbr.rel (!%p20_p5) target bundleno = 5 (0x5), region = 103 }
 0x316   :  { %1036 = vsyncpa [#allocation5], 1 }
 0x317   :  { %1038 = vsyncpa [#allocation5 + $0x1], 1 }
 0x318   :  { %1039 = vsyncpa [#allocation6], 1 }
 0x319   :  { %1041 = vsyncpa [#allocation6 + $0x1], 1 }
 0x31a   :  { %1042 = vsyncpa [#allocation9], 1 }

</bundles_post_ra>
